<compile_context>
chip_gen: v6e
topology: v6e:2x2x1
jax: 0.10.0
libtpu: 0.0.40
codegen_flags: <defaults>
</compile_context>

<pallas_src>
import jax
import jax.numpy as jnp
from jax.experimental import pallas as pl
from jax.experimental.pallas import tpu as pltpu


def conv1x1_pallas(x_nchw, weight, bias=None, *,
                   max_tile_s=2048, max_tile_co=512, vpu_cin_threshold=8):
    """1x1 conv, semantics of nn.Conv2d(dim1, dim2, kernel_size=1, bias=True).

    x_nchw : (N, Cin, H, W) float32
    weight : (Cout, Cin, 1, 1) float32   (PyTorch conv weight layout)
    bias   : (Cout,) float32 or None
    returns: (N, Cout, H, W) float32
    """
    N, Cin, H, W = x_nchw.shape
    Cout = weight.shape[0]
    S = H * W

    # Free reshapes only — no transposes, no pad copies.
    x3 = x_nchw.reshape(N, Cin, S)
    w_mat = weight.reshape(Cout, Cin)
    if bias is None:
        bias = jnp.zeros((Cout,), dtype=x_nchw.dtype)
    b_col = bias.reshape(Cout, 1)

    # Spatial tile: lane-dense (full S, or a multiple of 128) and large enough
    # to amortize the ~600-cycle per-grid-step overhead.
    if S <= max_tile_s:
        tile_s = S                       # full-extent block is always legal
    else:
        tile_s = max_tile_s              # multiple of 128; last block masked

    # Cout tile (parallel axis; multiple of 8 when Cout is large).
    tile_co = Cout if Cout <= max_tile_co else max_tile_co

    # Conservative VMEM budget: double-buffered in/out tiles + weight/bias tile.
    def _footprint(ts, tco):
        return 4 * (2 * (Cin * ts) + 2 * (tco * ts) + 2 * (tco * Cin) + 2 * tco)

    budget = 24 << 20  # stay well under the 32 MiB default scoped VMEM (v6e/v7x)
    while tile_s > 128 and _footprint(tile_s, tile_co) > budget:
        tile_s = max(128, (tile_s // 2) // 128 * 128)

    grid = (N, pl.cdiv(Cout, tile_co), pl.cdiv(S, tile_s))

    use_vpu = Cin <= vpu_cin_threshold  # tiny K: keep the contraction off the MXU

    def kernel(x_ref, w_ref, b_ref, o_ref):
        # x_ref: (1, Cin, TS)  w_ref: (TCO, Cin)  b_ref: (TCO, 1)  o_ref: (1, TCO, TS)
        if use_vpu:
            # Unrolled per-channel broadcast FMA on the VPU (K is tiny).
            acc = jnp.zeros((tile_co, tile_s), dtype=jnp.float32)
            for ci in range(Cin):
                wc = w_ref[:, ci:ci + 1].astype(jnp.float32)     # (TCO, 1)
                xc = x_ref[0, ci:ci + 1, :].astype(jnp.float32)  # (1, TS)
                acc = acc + wc * xc
        else:
            # MXU path, oriented so the large dim (TS) is the MXU N dim.
            acc = jnp.dot(w_ref[...], x_ref[0],
                          preferred_element_type=jnp.float32)
        o_ref[0] = (acc + b_ref[...]).astype(o_ref.dtype)

    bytes_accessed = 4 * (N * Cin * S + N * Cout * S + Cout * Cin + Cout)
    cost = pl.CostEstimate(flops=2 * N * S * Cin * Cout,
                           transcendentals=0,
                           bytes_accessed=bytes_accessed)

    out3 = pl.pallas_call(
        kernel,
        out_shape=jax.ShapeDtypeStruct((N, Cout, S), x_nchw.dtype),
        grid_spec=pltpu.PrefetchScalarGridSpec(
            num_scalar_prefetch=0,
            grid=grid,
            in_specs=[
                pl.BlockSpec((1, Cin, tile_s), lambda n, co, s: (n, 0, s)),   # x tile
                pl.BlockSpec((tile_co, Cin), lambda n, co, s: (co, 0)),       # weight tile
                pl.BlockSpec((tile_co, 1), lambda n, co, s: (co, 0)),         # bias column
            ],
            out_specs=pl.BlockSpec((1, tile_co, tile_s),
                                   lambda n, co, s: (n, co, s)),
        ),
        compiler_params=pltpu.CompilerParams(
            dimension_semantics=("parallel", "parallel", "parallel")),
        cost_estimate=cost,
    )(x3, w_mat, b_col)

    return out3.reshape(N, Cout, H, W)


def _ref_conv1x1(x, weight, bias):
    Cout, Cin = weight.shape[0], weight.shape[1]
    return (jnp.einsum("nchw,oc->nohw", x, weight.reshape(Cout, Cin))
            + bias.reshape(1, Cout, 1, 1))


if __name__ == "__main__":
    key = jax.random.PRNGKey(0)
    k_x, k_w, k_b, k_x2, k_w2, k_b2 = jax.random.split(key, 6)

    # Small shapes consistent with the module: N=2, dim1=4, dim2=8, H=W=16
    N, Cin, Cout, H, W = 2, 4, 8, 16, 16
    x = jax.random.normal(k_x, (N, Cin, H, W), dtype=jnp.float32)
    weight = jax.random.normal(k_w, (Cout, Cin, 1, 1), dtype=jnp.float32) * 0.1
    bias = jax.random.normal(k_b, (Cout,), dtype=jnp.float32) * 0.1

    out = conv1x1_pallas(x, weight, bias)
    out = jax.block_until_ready(out)
    ref = _ref_conv1x1(x, weight, bias)
    assert out.shape == (N, Cout, H, W)
    assert jnp.allclose(out, ref, atol=1e-5, rtol=1e-5)

    # Also exercise the MXU (larger-Cin) path of the same kernel.
    Cin2, Cout2 = 32, 16
    x2 = jax.random.normal(k_x2, (N, Cin2, H, W), dtype=jnp.float32)
    w2 = jax.random.normal(k_w2, (Cout2, Cin2, 1, 1), dtype=jnp.float32) * 0.1
    b2 = jax.random.normal(k_b2, (Cout2,), dtype=jnp.float32) * 0.1
    out2 = jax.block_until_ready(conv1x1_pallas(x2, w2, b2))
    ref2 = _ref_conv1x1(x2, w2, b2)
    assert jnp.allclose(out2, ref2, atol=1e-4, rtol=1e-4)

    print("KERNEL_OK")
</pallas_src>

<mosaic_0001>
module attributes {stable_mosaic.version = 11 : i64} {
  func.func @kernel(%arg0: i32, %arg1: i32, %arg2: i32, %arg3: memref<1x4x256xf32, #tpu.memory_space<vmem>>, %arg4: memref<8x4xf32, #tpu.memory_space<vmem>>, %arg5: memref<8x1xf32, #tpu.memory_space<vmem>>, %arg6: memref<1x8x256xf32, #tpu.memory_space<vmem>>) attributes {dimension_semantics = [#tpu.dimension_semantics<parallel>, #tpu.dimension_semantics<parallel>, #tpu.dimension_semantics<parallel>], iteration_bounds = array<i64: 2, 1, 1>, scalar_prefetch = 0 : i64, scratch_operands = 0 : i64, tpu.core_type = #tpu.core_type<tc>, window_params = [{transform_indices = @transform_0, window_bounds = array<i64: 1, 4, 256>}, {transform_indices = @transform_1, window_bounds = array<i64: 8, 4>}, {transform_indices = @transform_2, window_bounds = array<i64: 8, 1>}, {transform_indices = @transform_3, window_bounds = array<i64: 1, 8, 256>}]} {
    %cst = arith.constant 0.000000e+00 : f32
    %0 = vector.broadcast %cst : f32 to vector<8x256xf32>
    %c0 = arith.constant 0 : index
    %c0_0 = arith.constant 0 : index
    %1 = vector.load %arg4[%c0, %c0_0] : memref<8x4xf32, #tpu.memory_space<vmem>>, vector<8x1xf32>
    %c0_1 = arith.constant 0 : index
    %c0_2 = arith.constant 0 : index
    %c0_3 = arith.constant 0 : index
    %2 = vector.load %arg3[%c0_1, %c0_2, %c0_3] : memref<1x4x256xf32, #tpu.memory_space<vmem>>, vector<1x1x256xf32>
    %3 = vector.shape_cast %2 : vector<1x1x256xf32> to vector<1x256xf32>
    %4 = vector.broadcast %1 : vector<8x1xf32> to vector<8x256xf32>
    %5 = vector.broadcast %3 : vector<1x256xf32> to vector<8x256xf32>
    %6 = arith.mulf %4, %5 : vector<8x256xf32>
    %7 = arith.addf %0, %6 : vector<8x256xf32>
    %c0_4 = arith.constant 0 : index
    %c1 = arith.constant 1 : index
    %8 = vector.load %arg4[%c0_4, %c1] : memref<8x4xf32, #tpu.memory_space<vmem>>, vector<8x1xf32>
    %c0_5 = arith.constant 0 : index
    %c1_6 = arith.constant 1 : index
    %c0_7 = arith.constant 0 : index
    %9 = vector.load %arg3[%c0_5, %c1_6, %c0_7] : memref<1x4x256xf32, #tpu.memory_space<vmem>>, vector<1x1x256xf32>
    %10 = vector.shape_cast %9 : vector<1x1x256xf32> to vector<1x256xf32>
    %11 = vector.broadcast %8 : vector<8x1xf32> to vector<8x256xf32>
    %12 = vector.broadcast %10 : vector<1x256xf32> to vector<8x256xf32>
    %13 = arith.mulf %11, %12 : vector<8x256xf32>
    %14 = arith.addf %7, %13 : vector<8x256xf32>
    %c0_8 = arith.constant 0 : index
    %c2 = arith.constant 2 : index
    %15 = vector.load %arg4[%c0_8, %c2] : memref<8x4xf32, #tpu.memory_space<vmem>>, vector<8x1xf32>
    %c0_9 = arith.constant 0 : index
    %c2_10 = arith.constant 2 : index
    %c0_11 = arith.constant 0 : index
    %16 = vector.load %arg3[%c0_9, %c2_10, %c0_11] : memref<1x4x256xf32, #tpu.memory_space<vmem>>, vector<1x1x256xf32>
    %17 = vector.shape_cast %16 : vector<1x1x256xf32> to vector<1x256xf32>
    %18 = vector.broadcast %15 : vector<8x1xf32> to vector<8x256xf32>
    %19 = vector.broadcast %17 : vector<1x256xf32> to vector<8x256xf32>
    %20 = arith.mulf %18, %19 : vector<8x256xf32>
    %21 = arith.addf %14, %20 : vector<8x256xf32>
    %c0_12 = arith.constant 0 : index
    %c3 = arith.constant 3 : index
    %22 = vector.load %arg4[%c0_12, %c3] : memref<8x4xf32, #tpu.memory_space<vmem>>, vector<8x1xf32>
    %c0_13 = arith.constant 0 : index
    %c3_14 = arith.constant 3 : index
    %c0_15 = arith.constant 0 : index
    %23 = vector.load %arg3[%c0_13, %c3_14, %c0_15] : memref<1x4x256xf32, #tpu.memory_space<vmem>>, vector<1x1x256xf32>
    %24 = vector.shape_cast %23 : vector<1x1x256xf32> to vector<1x256xf32>
    %25 = vector.broadcast %22 : vector<8x1xf32> to vector<8x256xf32>
    %26 = vector.broadcast %24 : vector<1x256xf32> to vector<8x256xf32>
    %27 = arith.mulf %25, %26 : vector<8x256xf32>
    %28 = arith.addf %21, %27 : vector<8x256xf32>
    %c0_16 = arith.constant 0 : index
    %c0_17 = arith.constant 0 : index
    %29 = vector.load %arg5[%c0_16, %c0_17] : memref<8x1xf32, #tpu.memory_space<vmem>>, vector<8x1xf32>
    %30 = vector.broadcast %29 : vector<8x1xf32> to vector<8x256xf32>
    %31 = arith.addf %28, %30 : vector<8x256xf32>
    %c0_18 = arith.constant 0 : index
    %c0_19 = arith.constant 0 : index
    %c0_20 = arith.constant 0 : index
    %32 = vector.load %arg6[%c0_18, %c0_19, %c0_20] : memref<1x8x256xf32, #tpu.memory_space<vmem>>, vector<1x8x256xf32>
    %33 = vector.shape_cast %32 : vector<1x8x256xf32> to vector<8x256xf32>
    %34 = vector.shape_cast %31 : vector<8x256xf32> to vector<1x8x256xf32>
    tpu.vector_store %arg6[%c0_18, %c0_19, %c0_20], %34 {strides = array<i32>} : memref<1x8x256xf32, #tpu.memory_space<vmem>>, vector<1x8x256xf32>,
    return
  }
  func.func @transform_0(%arg0: i32, %arg1: i32, %arg2: i32) -> (i32, i32, i32) {
    %c0_i32 = arith.constant 0 : i32
    %c0_i32_0 = arith.constant 0 : i32
    return %arg0, %c0_i32, %arg2 : i32, i32, i32
  }
  func.func @transform_1(%arg0: i32, %arg1: i32, %arg2: i32) -> (i32, i32) {
    %c0_i32 = arith.constant 0 : i32
    %c0_i32_0 = arith.constant 0 : i32
    return %arg1, %c0_i32 : i32, i32
  }
  func.func @transform_2(%arg0: i32, %arg1: i32, %arg2: i32) -> (i32, i32) {
    %c0_i32 = arith.constant 0 : i32
    %c0_i32_0 = arith.constant 0 : i32
    return %arg1, %c0_i32 : i32, i32
  }
  func.func @transform_3(%arg0: i32, %arg1: i32, %arg2: i32) -> (i32, i32, i32) {
    %c0_i32 = arith.constant 0 : i32
    return %arg0, %arg1, %arg2 : i32, i32, i32
  }
}

</mosaic_0001>

<bundles_post_ra>
// kernel: tpu_custom_call.1
= control target key start
LH: loop header
LB: loop body
LE: loop exit
PB: predicated region body
PF: predicated region fallthrough
CT: control target
= control target key end

     0   :  { %8 = vsyncpa [#allocation3], 0  ;;  %s771_s0 = inlined_call_operand.vmem [shape: f32[2,4,256], index: 0, kind: input, shape index: {}]   ;;  %s772_s1 = inlined_call_operand.vmem [shape: f32[8,4], index: 1, kind: input, shape index: {}]   ;;  %s773_s2 = inlined_call_operand.vmem [shape: f32[8,1], index: 2, kind: input, shape index: {}]   ;;  %s774_s3 = inlined_call_operand.hbm [shape: f32[2,8,256], index: 3, kind: output, shape index: {}]  }
   0x1   :  { %10 = vsyncpa [#allocation3 + $0x1], 0  ;;  %s656_s12 = smov 0   ;;  %s658_s13 = smov 0  }
   0x2   :  { %s660_s14 = smov 0   ;;  %s662_s15 = smov 0  }
   0x3   :  { %s664_s16 = smov 0   ;;  %s666_s17 = smov 0  }
   0x4 LB: > { %s468_s18 = sadd.s32 4294967295, %s629_s17   ;;  %s469_s19 = sadd.s32 4294967294, %s629_s17   ;;  %s629_s17 = sphi %s666_s17, %s16_s17   ;;  %s625_s16 = sphi %s664_s16, %s781_s16   ;;  %s621_s15 = sphi %s662_s15, %s780_s15   ;;  %s617_s14 = sphi %s660_s14, %s779_s14   ;;  %s613_s13 = sphi %s658_s13, %s778_s13   ;;  %s609_s12 = sphi %s656_s12, %s777_s12  }
   0x5   : > { %s35_s20 = sadd.s32 1, %s625_s16  ;;  %s126_s21 = sadd.s32 1, %s617_s14 }
   0x6   : > { %p37_p0 = scmp.ge.s32.totalorder %s35_s20, 2  ;;  %p136_p1 = scmp.ne.s32.totalorder %s617_s14, %s613_s13 }
   0x7   : > { %p137_p2 = scmp.eq.s32.totalorder %s468_s18, 1  ;;  %p142_p3 = scmp.ne.s32.totalorder %s613_s13, %s609_s12 }
   0x8   : > { %s783_s20 = smov (%p37_p0, %s35_s20), 0  ;;  %p143_p5 = scmp.eq.s32.totalorder %s469_s19, 1 }
   0x9   : > { %p696_p4 = por %p137_p2, %p136_p1  ;;  %s119_s23 = ssub.s32 %s625_s16, %s783_s20 }
   0xa   : > { %p474_p6 = scmp.ge.s32.totalorder %s629_s17, 1  ;;  %p124_p7 = scmp.eq.s32.totalorder %s119_s23, 0 }
   0xb   : > { %p703_p8 = por %p143_p5, %p142_p3  ;;  %p188_p9 = scmp.lt.s32.totalorder %s629_s17, 3 }
   0xc   : > { %s709_s25 = scalar_select %p124_p7, %s617_s14, %s126_s21  }
   0xd   : > { %p189_p10 = pnand %p474_p6, %p188_p9 }
   0xe   : > { %p225_p11 = scmp.lt.s32.totalorder (!%p189_p10), %s621_s15, 1  ;;  %s221_s8 = sand.u32 (!%p189_p10), 1, %s613_s13  }
   0xf   : > { %192 = sbr.rel (%p189_p10) target bundleno = 174 (0xae), region = 32  ;;  %s475_s9 = sshll.u32 (!%p189_p10), %s221_s8, 4 }
  0x10   : > { %s487_s10 = sshll.u32 (!%p189_p10), %s621_s15, 8  ;;  %s223_s11 = scalar_lea.vmem (!%p189_p10), [#allocation2], %s475_s9 }
  0x11   : > { %s357_s18 = sshll.u32 (!%p189_p10), %s223_s11, 4  ;;  %s729_s23 = scalar_lea.hbm (!%p189_p10), %s774_s3, %s487_s10  ;;  %s358_s18 = int_to_ptr.vmem [resolvable:$true] %s357_s18 }
  0x12   : > { %s339_s26 = scalar_lea.sflag (!%p189_p10), [#allocation3], %s221_s8  ;;  %s553_s27 = scalar_lea.vmem (!%p189_p10), %s358_s18, 256 }
  0x13   : > { %p554_p12 = scmp.ne.s32.totalorder (!%p189_p10), %s358_s18, %s553_s27 }
  0x14   : > { %v243_v0 = vld [vmem:[%s772_s1] sm:$0xff]  ;;  %v631_v1 = vmov 0   ;;  %v632_v2 = vmov 2   ;;  %v633_v3 = vmov 1   ;;  %v634_v4 = vmov 3   ;;  %s226_s30 = scalar_select %p225_p11, %s621_s15, 1 }
  0x15   : > { %547 = vset.pattern.permute.xlu0 %v631_v1  ;;  %549 = vset.pattern.permute.xlu1 %v632_v2  ;;  %v328_v5 = vld [vmem:[%s773_s2] sm:$0xff]  ;;  %v251_v6 = vlaneseq  ;;  %p555_p13 = pnand %p554_p12, %p696_p4  ;;  %s635_s15 = smov [#allocation2]  }
  0x16   : > { %247 = vperm.xlu0 %547, %v243_v0   ;;  %289 = vperm.xlu1 %549, %v243_v0   ;;  %s486_s4 = sshll.u32 %s226_s30, 3  ;;  %s557_s28 = sshll.u32 %s635_s15, 4  ;;  %s558_s28 = int_to_ptr.vmem [resolvable:$false] %s557_s28 }
  0x17   : > { %v252_v7 = vshrl.u32 %v251_v6, 7  ;;  %s232_s7 = scalar_lea.vmem %s771_s0, %s486_s4  ;;  %p556_p0 = pneg %p555_p13 }
  0x18   : > { %v244_v10 = vld [vmem:[%s232_s7] ss:$4 sm:$0x3]  ;;  %v478_v11 = vld [vmem:[%s232_s7 + $0x1] ss:$4 sm:$0x3]  ;;  %p560_p1 = scmp.lt.s32.totalorder %s358_s18, %s558_s28 }
  0x19   : > { %v253_v8 = vsub.s32 0, %v252_v7  ;;  %v257_v9 = vsub.s32 1, %v252_v7  ;;  %v479_v14 = vld [vmem:[%s232_s7 + $0x2] ss:$4 sm:$0x3]  ;;  %s559_s29 = scalar_lea.vmem %s558_s28, 512 }
  0x1a   : > { %548 = vset.pattern.permute.xlu0 %v633_v3  ;;  %550 = vset.pattern.permute.xlu1 %v634_v4  ;;  %v480_v15 = vld [vmem:[%s232_s7 + $0x3] ss:$4 sm:$0x3]  ;;  %p561_p2 = scmp.lt.s32.totalorder %s559_s29, %s553_s27 }
  0x1b   : > { %268 = vperm.xlu0 %548, %v243_v0   ;;  %310 = vperm.xlu1 %550, %v243_v0   ;;  %v254_v16 = vrot.slane %v244_v10, %v253_v8  ;;  %v258_v17 = vrot.slane %v244_v10, %v257_v9  ;;  %v275_v18 = vrot.slane %v478_v11, %v253_v8 }
  0x1c   : > { %v279_v19 = vrot.slane %v478_v11, %v257_v9  ;;  %v296_v20 = vrot.slane %v479_v14, %v253_v8  ;;  %v300_v21 = vrot.slane %v479_v14, %v257_v9  ;;  %v317_v22 = vrot.slane %v480_v15, %v253_v8  ;;  %p562_p3 = por %p561_p2, %p560_p1 }
  0x1d   : > { %v321_v23 = vrot.slane %v480_v15, %v257_v9 }
  0x1e   : > { %p563_p5 = pnand %p562_p3, %p556_p0 }
  0x1f   : > { %551 = vset.pattern.permute.xlu1 %v631_v1  ;;  %552 = vset.pattern.permute.xlu0 %v631_v1 }
  0x20   : > { %331 = vperm.xlu1 %551, %v328_v5  }
  0x91   : > { %v248_v12 = vpop.permute.xlu0 %247  ;;  %v290_v13 = vpop.permute.xlu1 %289 }
  0x92   : > { %v261_v26 = vmul.f32 %v254_v16, %v248_v12  ;;  %v262_v27 = vmul.f32 %v258_v17, %v248_v12  ;;  %v303_v30 = vmul.f32 %v296_v20, %v290_v13  ;;  %v304_v31 = vmul.f32 %v300_v21, %v290_v13 }
  0x96   : > { %v269_v24 = vpop.permute.xlu0 %268  ;;  %v311_v25 = vpop.permute.xlu1 %310 }
  0x97   : > { %v282_v28 = vmul.f32 %v275_v18, %v269_v24  ;;  %v283_v29 = vmul.f32 %v279_v19, %v269_v24  ;;  %v324_v34 = vmul.f32 %v317_v22, %v311_v25  ;;  %v325_v35 = vmul.f32 %v321_v23, %v311_v25 }
  0x99   : > { %v284_v32 = vadd.f32 %v282_v28, %v261_v26  ;;  %v285_v33 = vadd.f32 %v283_v29, %v262_v27 }
  0x9b   : > { %v305_v36 = vadd.f32 %v303_v30, %v284_v32  ;;  %v306_v37 = vadd.f32 %v304_v31, %v285_v33  ;;  %v332_v38 = vpop.permute.xlu1 %331 }
  0x9d   : > { %v326_v39 = vadd.f32 %v324_v34, %v305_v36  ;;  %v327_v40 = vadd.f32 %v325_v35, %v306_v37 }
  0x9f   : > { %v334_v41 = vadd.f32 %v332_v38, %v326_v39  ;;  %v335_v42 = vadd.f32 %v332_v38, %v327_v40 }
  0xa1   : > { %336 = vst [vmem:[%s223_s11] sm:$0xff] %v334_v41  ;;  %337 = vst [vmem:[%s223_s11 + $0x8] sm:$0xff] %v335_v42 }
  0xa2   : > { %566 = shalt.err (!%p563_p5)
}
  0xa3   : > { %s567_s30 = scalar_lea.hbm %s729_s23, 256  ;;  %s571_s6 = scalar_lea.hbm %s774_s3, 512 }
  0xa4   : > { %p568_p6 = scmp.ne.s32.totalorder %s729_s23, %s567_s30  ;;  %p572_p10 = scmp.lt.s32.totalorder %s729_s23, %s774_s3 }
  0xa5   : > { %p573_p11 = scmp.lt.s32.totalorder %s571_s6, %s567_s30 }
  0xa6   : > { %p569_p7 = pnand %p568_p6, %p696_p4 }
  0xa7   : > { %p574_p12 = por %p573_p11, %p572_p10 }
  0xa8   : > { %p570_p9 = pneg %p569_p7 }
  0xaa   : > { %p575_p13 = pnand %p574_p12, %p570_p9 }
  0xac   : > { %578 = shalt.err (!%p575_p13)
}
  0xad   : > { %488 = dma.vmem_to_hbm [thread:$0]  (%p696_p4), %s358_s18, 256, %s729_s23, %s339_s26  }
  0xae PF: > { %p494_p0 = scmp.ge.s32.totalorder %s629_s17, 2  ;;  %s369_s9 = sand.u32 1, %s609_s12  }
  0xaf   : > { %s370_s10 = scalar_lea.sflag [#allocation3], %s369_s9 }
  0xb0   : > { %p491_p1 = pnand %p494_p0, %p703_p8 }
  0xb2   : > { %p492_p2 = pneg %p491_p1 }
  0xb4   : > { %604 = dma.done.wait (%p492_p2), %s370_s10, 256  }
  0xb5   : > { %606 = vsyncadd (%p492_p2), %s370_s10, 4294967040  ;;  %s16_s17 = sadd.s32 1, %s629_s17   ;;  %s777_s12 = smov %s613_s13 }
  0xb6   : > { %p13_p3 = scmp.ge.s32.totalorder %s16_s17, 4   ;;  %s778_s13 = smov %s617_s14 }
  0xb7   : > { %s779_s14 = smov %s709_s25  ;;  %s780_s15 = smov %s625_s16 }
  0xb8   : > { %s781_s16 = smov %s783_s20  ;;  %15 = sbr.rel (!%p13_p3) target bundleno = 4 (0x4), region = 76 }
  0xbd   :  { %375 = vsyncpa [#allocation3], 1 }
  0xbe   :  { %377 = vsyncpa [#allocation3 + $0x1], 1 }

</bundles_post_ra>
